<compile_context>
chip_gen: v5e
topology: v5e:2x2
jax: 0.10.0
libtpu: 0.0.40
codegen_flags: <defaults>
</compile_context>

<pallas_src>
import functools

import jax
import jax.numpy as jnp
from jax.experimental import pallas as pl
from jax.experimental.pallas import tpu as pltpu

LANES = 128          # lane width of the flattened slab (last dim)
ACC_ROWS = 8         # sublane rows kept in the lane-parallel accumulators (1 f32 vreg)
MAX_ROW_TILE = 8192  # rows per grid step (<= ~12 MiB/step even if all-f32)
ROW_ALIGN = 16       # row-tile alignment (bf16 sublane packing = (16, 128))


def _as_kernel_dtype(a):
    """Keep f32/bf16 inputs as-is (bandwidth win for bf16 labels/mask)."""
    a = jnp.asarray(a)
    if a.dtype in (jnp.float32, jnp.bfloat16):
        return a
    return a.astype(jnp.float32)


def _bce_kernel(yp_ref, yt_ref, m_ref, num_ref, den_ref, *,
                eps, row_tile, n_tiles, last_valid_rows, hard_labels):
    i = pl.program_id(0)

    @pl.when(i == 0)
    def _init():
        num_ref[...] = jnp.zeros_like(num_ref)
        den_ref[...] = jnp.zeros_like(den_ref)

    groups = row_tile // ACC_ROWS

    def accumulate(yp, yt, m):
        # yp / yt / m: (row_tile, LANES) float32.
        if hard_labels:
            # Opt-in fast path for {0,1} labels: one log per element.
            ll = jnp.log(jnp.where(yt > 0.5, yp, 1.0 - yp) + eps)
        else:
            # Exact two-log form of the reference module (soft labels OK).
            ll = yt * jnp.log(yp + eps) + (1.0 - yt) * jnp.log((1.0 - yp) + eps)
        contrib = ll * m
        # Lane-parallel partial reduction: (row_tile,128) -> (8,128), VPU adds only.
        num_ref[...] += jnp.sum(contrib.reshape(groups, ACC_ROWS, LANES), axis=0)
        den_ref[...] += jnp.sum(m.reshape(groups, ACC_ROWS, LANES), axis=0)

    if last_valid_rows == row_tile:
        # row_tile divides rows: every tile is fully in-bounds -> mask-free body.
        accumulate(yp_ref[...].astype(jnp.float32),
                   yt_ref[...].astype(jnp.float32),
                   m_ref[...].astype(jnp.float32))
    else:
        @pl.when(i < n_tiles - 1)
        def _full_tile():  # hot path: no iota / compares / selects
            accumulate(yp_ref[...].astype(jnp.float32),
                       yt_ref[...].astype(jnp.float32),
                       m_ref[...].astype(jnp.float32))

        @pl.when(i == n_tiles - 1)
        def _ragged_tile():  # only the single over-hanging last tile is masked
            row = jax.lax.broadcasted_iota(jnp.int32, (row_tile, LANES), 0)
            valid = row < last_valid_rows
            # Sanitize ALL operands: OOB rows hold undefined data and must
            # neither produce NaN/Inf (yp, yt) nor contribute (m).
            yp = jnp.where(valid, yp_ref[...].astype(jnp.float32), 0.5)
            yt = jnp.where(valid, yt_ref[...].astype(jnp.float32), 0.0)
            m = jnp.where(valid, m_ref[...].astype(jnp.float32), 0.0)
            accumulate(yp, yt, m)


def masked_bce(y_pred, y_true, mask, eps=1e-8, hard_labels=False):
    """Pallas equivalent of BinaryCrossEntropy.forward.

    Returns sum(-(yt*log(yp+eps) + (1-yt)*log(1-yp+eps)) * mask) / sum(mask).
    NOTE: if mask sums to zero the result is NaN (0/0), same as the reference.
    """
    yp = _as_kernel_dtype(y_pred).reshape(-1)
    yt = _as_kernel_dtype(y_true).reshape(-1)
    m = _as_kernel_dtype(mask).reshape(-1)

    n = yp.shape[0]
    rows = n // LANES

    num = jnp.float32(0.0)   # accumulates  sum(log-likelihood * mask)
    den = jnp.float32(0.0)   # accumulates  sum(mask)

    use_kernel = rows >= ROW_ALIGN
    body = rows * LANES if use_kernel else 0

    if use_kernel:
        # Zero-copy reshape when n % 128 == 0; otherwise a prefix slice (the
        # <128-element remainder is handled by the plain-JAX tail below, no
        # whole-tensor pad).
        yp2 = yp[:body].reshape(rows, LANES)
        yt2 = yt[:body].reshape(rows, LANES)
        m2 = m[:body].reshape(rows, LANES)

        # Largest aligned row tile that does not exceed the array (so only the
        # standard partial *last* block can over-hang the array bounds).
        row_tile = min(MAX_ROW_TILE, (rows // ROW_ALIGN) * ROW_ALIGN)
        n_tiles = -(-rows // row_tile)
        last_valid_rows = rows - (n_tiles - 1) * row_tile  # == row_tile iff even split

        in_spec = pl.BlockSpec((row_tile, LANES), lambda i: (i, 0))
        out_spec = pl.BlockSpec((ACC_ROWS, LANES), lambda i: (0, 0))

        # Explicit VMEM budget: 2 buffers x 3 input blocks (+ slack), so big
        # tiles stay legal on v5e (16 MiB default scoped) and within v7x's
        # 64 MiB physical VMEM.
        block_bytes = row_tile * LANES * sum(a.dtype.itemsize for a in (yp2, yt2, m2))
        vmem_limit = max(32 << 20, 2 * block_bytes + (8 << 20))

        num_part, den_part = pl.pallas_call(
            functools.partial(_bce_kernel, eps=float(eps), row_tile=row_tile,
                              n_tiles=n_tiles, last_valid_rows=last_valid_rows,
                              hard_labels=bool(hard_labels)),
            out_shape=(
                jax.ShapeDtypeStruct((ACC_ROWS, LANES), jnp.float32),
                jax.ShapeDtypeStruct((ACC_ROWS, LANES), jnp.float32),
            ),
            grid_spec=pltpu.PrefetchScalarGridSpec(
                num_scalar_prefetch=0,
                grid=(n_tiles,),
                in_specs=[in_spec, in_spec, in_spec],
                out_specs=(out_spec, out_spec),
            ),
            compiler_params=pltpu.CompilerParams(
                dimension_semantics=("arbitrary",),   # reduction axis
                vmem_limit_bytes=int(vmem_limit)),
        )(yp2, yt2, m2)

        num = num + jnp.sum(num_part)
        den = den + jnp.sum(den_part)

    if n - body > 0:
        # Tiny tail (< 2048 elements): plain JAX, avoids any pad/copy of the bulk.
        yp_t = yp[body:].astype(jnp.float32)
        yt_t = yt[body:].astype(jnp.float32)
        m_t = m[body:].astype(jnp.float32)
        if hard_labels:
            ll_t = jnp.log(jnp.where(yt_t > 0.5, yp_t, 1.0 - yp_t) + eps)
        else:
            ll_t = yt_t * jnp.log(yp_t + eps) + (1.0 - yt_t) * jnp.log((1.0 - yp_t) + eps)
        num = num + jnp.sum(ll_t * m_t)
        den = den + jnp.sum(m_t)

    # Kernel accumulates +log-likelihood*mask; one negation + divide here.
    return -num / den


def _reference(y_pred, y_true, mask, eps=1e-8):
    loss = -(y_true * jnp.log(y_pred + eps)
             + (1.0 - y_true) * jnp.log(1.0 - y_pred + eps))
    return jnp.sum(loss * mask) / jnp.sum(mask)


if __name__ == "__main__":
    key = jax.random.PRNGKey(0)
    k1, k2, k3 = jax.random.split(key, 3)

    # CARCA-style shapes: (batch, seq, candidates) -> clean lane-multiple case.
    B, S, C = 2, 8, 128
    y_pred = jax.random.uniform(k1, (B, S, C), jnp.float32, 1e-4, 1.0 - 1e-4)
    # Labels / mask are {0,1} in CARCA -> exact in bf16; halves their HBM bytes.
    y_true = (jax.random.uniform(k2, (B, S, C)) > 0.5).astype(jnp.bfloat16)
    mask = (jax.random.uniform(k3, (B, S, C)) > 0.3).astype(jnp.bfloat16)

    out = jax.block_until_ready(masked_bce(y_pred, y_true, mask))
    ref = _reference(y_pred, y_true.astype(jnp.float32), mask.astype(jnp.float32))
    assert jnp.allclose(out, ref, rtol=1e-5, atol=1e-6), (out, ref)

    # Ragged case: non-multiple-of-128 element count + ragged last row tile,
    # exercising the masked pl.when branch and the plain-JAX tail epilogue.
    k4, k5, k6 = jax.random.split(jax.random.PRNGKey(1), 3)
    B2, S2, C2 = 3, 6, 127
    yp2 = jax.random.uniform(k4, (B2, S2, C2), jnp.float32, 1e-4, 1.0 - 1e-4)
    yt2 = jax.random.uniform(k5, (B2, S2, C2), jnp.float32)   # soft labels
    m2 = (jax.random.uniform(k6, (B2, S2, C2)) > 0.3).astype(jnp.float32)
    out2 = jax.block_until_ready(masked_bce(yp2, yt2, m2))
    ref2 = _reference(yp2, yt2, m2)
    assert jnp.allclose(out2, ref2, rtol=1e-5, atol=1e-6), (out2, ref2)

    print("KERNEL_OK")
</pallas_src>

<mosaic_0001>
module attributes {stable_mosaic.version = 11 : i64} {
  func.func @_bce_kernel(%arg0: i32, %arg1: memref<16x128xf32, #tpu.memory_space<vmem>>, %arg2: memref<16x128xbf16, #tpu.memory_space<vmem>>, %arg3: memref<16x128xbf16, #tpu.memory_space<vmem>>, %arg4: memref<8x128xf32, #tpu.memory_space<vmem>>, %arg5: memref<8x128xf32, #tpu.memory_space<vmem>>) attributes {dimension_semantics = [#tpu.dimension_semantics<arbitrary>], iteration_bounds = array<i64: 1>, scalar_prefetch = 0 : i64, scratch_operands = 0 : i64, tpu.core_type = #tpu.core_type<tc>, window_params = [{transform_indices = @transform_0, window_bounds = array<i64: 16, 128>}, {transform_indices = @transform_1, window_bounds = array<i64: 16, 128>}, {transform_indices = @transform_2, window_bounds = array<i64: 16, 128>}, {pipeline_mode = #tpu.pipeline_mode<synchronous>, transform_indices = @transform_3, window_bounds = array<i64: 8, 128>}, {pipeline_mode = #tpu.pipeline_mode<synchronous>, transform_indices = @transform_4, window_bounds = array<i64: 8, 128>}]} {
    %c0_i32 = arith.constant 0 : i32
    %0 = arith.cmpi eq, %arg0, %c0_i32 : i32
    %1 = arith.extui %0 : i1 to i32
    %c0_i32_0 = arith.constant 0 : i32
    %2 = arith.cmpi ne, %1, %c0_i32_0 : i32
    scf.if %2 {
      %cst_19 = arith.constant 0.000000e+00 : f32
      %32 = vector.broadcast %cst_19 : f32 to vector<8x128xf32>
      %c0_20 = arith.constant 0 : index
      %c0_21 = arith.constant 0 : index
      %33 = vector.load %arg4[%c0_20, %c0_21] : memref<8x128xf32, #tpu.memory_space<vmem>>, vector<8x128xf32>
      tpu.vector_store %arg4[%c0_20, %c0_21], %32 {strides = array<i32>} : memref<8x128xf32, #tpu.memory_space<vmem>>, vector<8x128xf32>,
      %cst_22 = arith.constant 0.000000e+00 : f32
      %34 = vector.broadcast %cst_22 : f32 to vector<8x128xf32>
      %c0_23 = arith.constant 0 : index
      %c0_24 = arith.constant 0 : index
      %35 = vector.load %arg5[%c0_23, %c0_24] : memref<8x128xf32, #tpu.memory_space<vmem>>, vector<8x128xf32>
      tpu.vector_store %arg5[%c0_23, %c0_24], %34 {strides = array<i32>} : memref<8x128xf32, #tpu.memory_space<vmem>>, vector<8x128xf32>,
    } else {
    }
    %c0 = arith.constant 0 : index
    %c0_1 = arith.constant 0 : index
    %3 = vector.load %arg1[%c0, %c0_1] : memref<16x128xf32, #tpu.memory_space<vmem>>, vector<16x128xf32>
    %c0_2 = arith.constant 0 : index
    %c0_3 = arith.constant 0 : index
    %4 = vector.load %arg2[%c0_2, %c0_3] : memref<16x128xbf16, #tpu.memory_space<vmem>>, vector<16x128xbf16>
    %5 = arith.extf %4 : vector<16x128xbf16> to vector<16x128xf32>
    %c0_4 = arith.constant 0 : index
    %c0_5 = arith.constant 0 : index
    %6 = vector.load %arg3[%c0_4, %c0_5] : memref<16x128xbf16, #tpu.memory_space<vmem>>, vector<16x128xbf16>
    %7 = arith.extf %6 : vector<16x128xbf16> to vector<16x128xf32>
    %cst = arith.constant 9.99999993E-9 : f32
    %8 = vector.broadcast %cst : f32 to vector<16x128xf32>
    %9 = arith.addf %3, %8 : vector<16x128xf32>
    %10 = math.log %9 : vector<16x128xf32>
    %11 = arith.mulf %5, %10 : vector<16x128xf32>
    %cst_6 = arith.constant 1.000000e+00 : f32
    %12 = vector.broadcast %cst_6 : f32 to vector<16x128xf32>
    %13 = arith.subf %12, %5 : vector<16x128xf32>
    %cst_7 = arith.constant 1.000000e+00 : f32
    %14 = vector.broadcast %cst_7 : f32 to vector<16x128xf32>
    %15 = arith.subf %14, %3 : vector<16x128xf32>
    %cst_8 = arith.constant 9.99999993E-9 : f32
    %16 = vector.broadcast %cst_8 : f32 to vector<16x128xf32>
    %17 = arith.addf %15, %16 : vector<16x128xf32>
    %18 = math.log %17 : vector<16x128xf32>
    %19 = arith.mulf %13, %18 : vector<16x128xf32>
    %20 = arith.addf %11, %19 : vector<16x128xf32>
    %21 = arith.mulf %20, %7 : vector<16x128xf32>
    %c0_9 = arith.constant 0 : index
    %c0_10 = arith.constant 0 : index
    %22 = vector.load %arg4[%c0_9, %c0_10] : memref<8x128xf32, #tpu.memory_space<vmem>>, vector<8x128xf32>
    %23 = vector.shape_cast %21 : vector<16x128xf32> to vector<2x8x128xf32>
    %cst_11 = arith.constant dense<0.000000e+00> : vector<8x128xf32>
    %24 = vector.multi_reduction <add>, %23, %cst_11 [0] : vector<2x8x128xf32> to vector<8x128xf32>
    %25 = arith.addf %22, %24 : vector<8x128xf32>
    %c0_12 = arith.constant 0 : index
    %c0_13 = arith.constant 0 : index
    %26 = vector.load %arg4[%c0_12, %c0_13] : memref<8x128xf32, #tpu.memory_space<vmem>>, vector<8x128xf32>
    tpu.vector_store %arg4[%c0_12, %c0_13], %25 {strides = array<i32>} : memref<8x128xf32, #tpu.memory_space<vmem>>, vector<8x128xf32>,
    %c0_14 = arith.constant 0 : index
    %c0_15 = arith.constant 0 : index
    %27 = vector.load %arg5[%c0_14, %c0_15] : memref<8x128xf32, #tpu.memory_space<vmem>>, vector<8x128xf32>
    %28 = vector.shape_cast %7 : vector<16x128xf32> to vector<2x8x128xf32>
    %cst_16 = arith.constant dense<0.000000e+00> : vector<8x128xf32>
    %29 = vector.multi_reduction <add>, %28, %cst_16 [0] : vector<2x8x128xf32> to vector<8x128xf32>
    %30 = arith.addf %27, %29 : vector<8x128xf32>
    %c0_17 = arith.constant 0 : index
    %c0_18 = arith.constant 0 : index
    %31 = vector.load %arg5[%c0_17, %c0_18] : memref<8x128xf32, #tpu.memory_space<vmem>>, vector<8x128xf32>
    tpu.vector_store %arg5[%c0_17, %c0_18], %30 {strides = array<i32>} : memref<8x128xf32, #tpu.memory_space<vmem>>, vector<8x128xf32>,
    return
  }
  func.func @transform_0(%arg0: i32) -> (i32, i32) {
    %c0_i32 = arith.constant 0 : i32
    %c0_i32_0 = arith.constant 0 : i32
    return %arg0, %c0_i32 : i32, i32
  }
  func.func @transform_1(%arg0: i32) -> (i32, i32) {
    %c0_i32 = arith.constant 0 : i32
    %c0_i32_0 = arith.constant 0 : i32
    return %arg0, %c0_i32 : i32, i32
  }
  func.func @transform_2(%arg0: i32) -> (i32, i32) {
    %c0_i32 = arith.constant 0 : i32
    %c0_i32_0 = arith.constant 0 : i32
    return %arg0, %c0_i32 : i32, i32
  }
  func.func @transform_3(%arg0: i32) -> (i32, i32) {
    %c0_i32 = arith.constant 0 : i32
    %c0_i32_0 = arith.constant 0 : i32
    %c0_i32_1 = arith.constant 0 : i32
    return %c0_i32, %c0_i32_0 : i32, i32
  }
  func.func @transform_4(%arg0: i32) -> (i32, i32) {
    %c0_i32 = arith.constant 0 : i32
    %c0_i32_0 = arith.constant 0 : i32
    %c0_i32_1 = arith.constant 0 : i32
    return %c0_i32, %c0_i32_0 : i32, i32
  }
}

</mosaic_0001>

<bundles_post_ra>
// kernel: tpu_custom_call.1
= control target key start
LH: loop header
LB: loop body
LE: loop exit
PB: predicated region body
PF: predicated region fallthrough
CT: control target
= control target key end

     0   :  { %10 = vsyncpa [#allocation3], 0  ;;  %s350_s0 = inlined_call_operand.hbm [shape: f32[16,128], index: 0, kind: input, shape index: {}]   ;;  %s351_s1 = inlined_call_operand.hbm [shape: bf16[16,128], index: 1, kind: input, shape index: {}]   ;;  %s352_s2 = inlined_call_operand.hbm [shape: bf16[16,128], index: 2, kind: input, shape index: {}]   ;;  %s353_s3 = inlined_call_operand.hbm [shape: f32[8,128], index: 3, kind: output, shape index: {0}]   ;;  %s354_s4 = inlined_call_operand.hbm [shape: f32[8,128], index: 4, kind: output, shape index: {1}]  }
   0x1   :  { %11 = vsyncpa [#allocation6], 0 }
   0x2   :  { %12 = vsyncpa [#allocation4], 0  ;;  %s31_s17 = sshll.u32 %s351_s1, 4  ;;  %s32_s17 = int_to_ptr.hbm [resolvable:$true] %s31_s17 }
   0x3   :  { %13 = vsyncpa [#allocation10], 0  ;;  %s301_s18 = smov [#allocation5]   ;;  %s18_s22 = sshll.u32 %s350_s0, 4  ;;  %s19_s22 = int_to_ptr.hbm [resolvable:$true] %s18_s22 }
   0x4   :  { %s33_s19 = sshll.u32 %s301_s18, 4  ;;  %s302_s23 = smov 64   ;;  %s34_s19 = int_to_ptr.vmem [resolvable:$true] %s33_s19 }
   0x5   :  { %s303_s24 = smov 4   ;;  %s304_s25 = smov [#allocation2]  }
   0x6   :  { %39 = dma.hbm_to_vmem [thread:$0]  %s32_s17, 128, %s34_s19, [#allocation6], %s302_s23, %s302_s23, %s303_s24  }
   0x7   :  { %s20_s26 = sshll.u32 %s304_s25, 4  ;;  %s305_s27 = smov 128   ;;  %s21_s26 = int_to_ptr.vmem [resolvable:$true] %s20_s26 }
   0x8   :  { %s306_s28 = smov 8   ;;  %s44_s30 = sshll.u32 %s352_s2, 4  ;;  %s45_s30 = int_to_ptr.hbm [resolvable:$true] %s44_s30 }
   0x9   :  { %26 = dma.hbm_to_vmem [thread:$0]  %s19_s22, 256, %s21_s26, [#allocation3], %s305_s27, %s305_s27, %s306_s28  }
   0xa   :  { %s307_s5 = smov [#allocation7]  }
   0xb   :  { %s46_s6 = sshll.u32 %s307_s5, 4  ;;  %s47_s6 = int_to_ptr.vmem [resolvable:$true] %s46_s6 }
   0xc   :  { %52 = dma.hbm_to_vmem [thread:$0]  %s45_s30, 128, %s47_s6, [#allocation6], %s302_s23, %s302_s23, %s303_s24  }
   0xd   :  { %293 = dma.done.wait [#allocation3], 256  }
   0xe   :  { %294 = vsyncadd [#allocation3], 4294967040 }
   0xf   :  { %295 = dma.done.wait [#allocation6], 256  }
  0x10   :  { %296 = vsyncadd [#allocation6], 4294967040  ;;  %v71_v0 = vld [vmem:[#allocation2] sm:$0xff]  ;;  %v72_v1 = vld [vmem:[#allocation2 + $0x8] sm:$0xff]  ;;  %s308_s0 = smov [#allocation9]   ;;  %s131_s9 = sshll.u32 %s354_s4, 4  ;;  %s132_s9 = int_to_ptr.hbm [resolvable:$true] %s131_s9 }
  0x11   :  { %v152_v2 = vld [vmem:[#allocation7] sm:$0xff]   ;;  %v81_v3 = vadd.f32 1e-08, %v71_v0  ;;  %v82_v4 = vadd.f32 1e-08, %v72_v1  ;;  %v91_v7 = vsub.f32 1.0, %v71_v0 }
  0x12   :  { %v153_v5 = vunpack.c.l.bf16 %v152_v2  ;;  %v154_v6 = vunpack.c.h.bf16 %v152_v2  ;;  %v92_v8 = vsub.f32 1.0, %v72_v1  ;;  %s129_s2 = sshll.u32 %s308_s0, 4  ;;  %v148_v9 = vld [vmem:[#allocation5] sm:$0xff]   ;;  %s309_s4 = smov [#allocation8]   ;;  %s130_s2 = int_to_ptr.vmem [resolvable:$true] %s129_s2 }
  0x13   :  { %165 = vlog2.f32 %v81_v3  ;;  %v93_v10 = vadd.f32 1e-08, %v91_v7  ;;  %v149_v13 = vunpack.c.l.bf16 %v148_v9  ;;  %v150_v14 = vunpack.c.h.bf16 %v148_v9  ;;  %s118_s10 = sshll.u32 %s309_s4, 4  ;;  %s120_s13 = sshll.u32 %s353_s3, 4  ;;  %s119_s10 = int_to_ptr.vmem [resolvable:$true] %s118_s10  ;;  %s121_s13 = int_to_ptr.hbm [resolvable:$true] %s120_s13 }
  0x14   :  { %167 = vlog2.f32 %v82_v4  ;;  %v94_v11 = vadd.f32 1e-08, %v92_v8  ;;  %v110_v12 = vadd.f32 %v154_v6, %v153_v5 }
  0x15   :  { %169 = vlog2.f32 %v93_v10  ;;  %v89_v19 = vsub.f32 1.0, %v149_v13  ;;  %v90_v21 = vsub.f32 1.0, %v150_v14 }
  0x16   :  { %171 = vlog2.f32 %v94_v11  ;;  %112 = vst [vmem:[#allocation9] sm:$0xff] %v110_v12 }
  0x17   :  { %134 = dma.vmem_to_hbm [thread:$0]  %s130_s2, 128, %s132_s9, [#allocation10]  }
  0x19   :  { %v166_v15 = vpop.eup %165 }
  0x1a   :  { %v168_v16 = vpop.eup %167  ;;  %v84_v17 = vmul.f32 0.6931472, %v166_v15 }
  0x1b   :  { %v86_v18 = vmul.f32 0.6931472, %v168_v16  ;;  %v170_v20 = vpop.eup %169 }
  0x1c   :  { %v172_v22 = vpop.eup %171  ;;  %v87_v23 = vmul.f32 %v149_v13, %v84_v17  ;;  %v96_v24 = vmul.f32 0.6931472, %v170_v20 }
  0x1d   :  { %v88_v25 = vmul.f32 %v150_v14, %v86_v18  ;;  %v98_v26 = vmul.f32 0.6931472, %v172_v22 }
  0x1e   :  { %v99_v27 = vmul.f32 %v96_v24, %v89_v19 }
  0x1f   :  { %v100_v28 = vmul.f32 %v98_v26, %v90_v21 }
  0x20   :  { %v101_v29 = vadd.f32 %v99_v27, %v87_v23 }
  0x21   :  { %v102_v30 = vadd.f32 %v100_v28, %v88_v25 }
  0x22   :  { %v103_v31 = vmul.f32 %v153_v5, %v101_v29 }
  0x23   :  { %v104_v32 = vmul.f32 %v154_v6, %v102_v30 }
  0x25   :  { %v106_v33 = vadd.f32 %v104_v32, %v103_v31 }
  0x27   :  { %108 = vst [vmem:[#allocation8] sm:$0xff] %v106_v33 }
  0x28   :  { %123 = dma.vmem_to_hbm [thread:$0]  %s119_s10, 128, %s121_s13, [#allocation4]  }
  0x29   :  { %297 = dma.done.wait [#allocation4], 128  }
  0x2a   :  { %298 = vsyncadd [#allocation4], 4294967168 }
  0x2b   :  { %299 = dma.done.wait [#allocation10], 128  }
  0x2c   :  { %300 = vsyncadd [#allocation10], 4294967168 }
  0x2d   :  { %143 = vsyncpa [#allocation3], 1 }
  0x2e   :  { %144 = vsyncpa [#allocation6], 1 }
  0x2f   :  { %145 = vsyncpa [#allocation4], 1 }
  0x30   :  { %146 = vsyncpa [#allocation10], 1 }

</bundles_post_ra>
